<compile_context>
chip_gen: v7x
topology: tpu7x:2x2x1
jax: 0.10.0
libtpu: 0.0.40
codegen_flags: <defaults>
</compile_context>

<pallas_src>
import jax
import jax.numpy as jnp
from jax.experimental import pallas as pl
from jax.experimental.pallas import tpu as pltpu

LANE = 128
BLOCK_BYTES = 4 << 20              # ~4 MiB per block, per array
SINGLE_BLOCK_MAX_BYTES = 512 << 10  # above this, force a multi-step grid
VMEM_LIMIT_BYTES = 48 << 20         # 16 MiB of buffers + headroom; fits v7x 64 MiB phys


def _sigmoid_kernel(x_ref, o_ref):
    # sigmoid(x) = 0.5 * tanh(0.5 * x) + 0.5  -> single EUP op per element,
    # VPU mul/add for the rest. Kernel is HBM-bandwidth bound; this keeps the
    # compute hidden under the DMA stream on all generations.
    x = x_ref[...]
    o_ref[...] = (0.5 * jnp.tanh(0.5 * x) + 0.5).astype(o_ref.dtype)


def _min_sublane(dtype) -> int:
    """Minimum sublane tile multiple per dtype (f32:8, bf16:16, int8/fp8:32)."""
    itemsize = jnp.dtype(dtype).itemsize
    if itemsize >= 4:
        return 8
    if itemsize == 2:
        return 16
    return 32


def _sigmoid_2d(x2d):
    """Run the Pallas sigmoid kernel on a (rows, 128) lane-dense slab."""
    rows, lane = x2d.shape
    dtype = x2d.dtype
    itemsize = jnp.dtype(dtype).itemsize
    sub = _min_sublane(dtype)
    total_bytes = rows * lane * itemsize

    if total_bytes <= SINGLE_BLOCK_MAX_BYTES:
        # Small input: one full-array block (no (8,128) divisibility needed,
        # and grid overhead / lack of pipelining is negligible at this size).
        block_rows = rows
        grid = (1,)
    else:
        # Large input: ~4 MiB blocks, but guarantee at least ~4 grid steps so
        # the auto-pipeline overlaps DMA with compute. Partial trailing block
        # is handled by the cdiv grid's masked store (no host-side padding).
        target_rows = max(sub, (BLOCK_BYTES // (lane * itemsize)) // sub * sub)
        quarter_rows = max(sub, (rows // 4) // sub * sub)
        block_rows = min(target_rows, quarter_rows)
        grid = (pl.cdiv(rows, block_rows),)

    n_elems = rows * lane
    cost = pl.CostEstimate(
        flops=2 * n_elems,
        transcendentals=n_elems,
        bytes_accessed=2 * n_elems * itemsize,
    )

    return pl.pallas_call(
        _sigmoid_kernel,
        out_shape=jax.ShapeDtypeStruct((rows, lane), dtype),
        grid=grid,
        in_specs=[pl.BlockSpec((block_rows, lane), lambda i: (i, 0))],
        out_specs=pl.BlockSpec((block_rows, lane), lambda i: (i, 0)),
        compiler_params=pltpu.CompilerParams(
            dimension_semantics=("parallel",),
            vmem_limit_bytes=VMEM_LIMIT_BYTES,
        ),
        cost_estimate=cost,
    )(x2d)


def sigmoid_pallas(x):
    """Elementwise sigmoid via a Pallas TPU kernel. Matches Test.forward."""
    orig_shape = x.shape
    n = x.size
    if n == 0:
        return x

    if n % LANE == 0:
        # Common path: metadata-only reshape to a lane-dense (rows, 128) slab.
        out2d = _sigmoid_2d(x.reshape(n // LANE, LANE))
        return out2d.reshape(orig_shape)

    # Rare fallback for sizes not divisible by 128: run the kernel only on the
    # 128-aligned prefix; the <128-element tail uses plain jax.nn.sigmoid.
    n_aligned = (n // LANE) * LANE
    x_flat = x.reshape(-1)
    if n_aligned == 0:
        return jax.nn.sigmoid(x)
    head = _sigmoid_2d(x_flat[:n_aligned].reshape(-1, LANE)).reshape(-1)
    tail = jax.nn.sigmoid(x_flat[n_aligned:])
    return jnp.concatenate([head, tail]).reshape(orig_shape)


if __name__ == "__main__":
    key = jax.random.PRNGKey(0)
    # NCHW input, matching PyTorch convention: batch=2, channels=4, 16x16 spatial.
    x = jax.random.normal(key, (2, 4, 16, 16), dtype=jnp.float32)

    y = sigmoid_pallas(x)
    y = jax.block_until_ready(y)

    # Correctness check against plain JAX reference.
    y_ref = jax.nn.sigmoid(x)
    assert y.shape == x.shape and y.dtype == x.dtype
    assert jnp.allclose(y, y_ref, atol=1e-6, rtol=1e-6)

    print("KERNEL_OK")
</pallas_src>

<mosaic_0001>
module attributes {stable_mosaic.version = 11 : i64} {
  func.func @_sigmoid_kernel(%arg0: i32, %arg1: memref<16x128xf32, #tpu.memory_space<vmem>>, %arg2: memref<16x128xf32, #tpu.memory_space<vmem>>) attributes {dimension_semantics = [#tpu.dimension_semantics<parallel>], iteration_bounds = array<i64: 1>, scalar_prefetch = 0 : i64, scratch_operands = 0 : i64, tpu.core_type = #tpu.core_type<tc>, window_params = [{transform_indices = @transform_0, window_bounds = array<i64: 16, 128>}, {transform_indices = @transform_1, window_bounds = array<i64: 16, 128>}]} {
    %c0 = arith.constant 0 : index
    %c0_0 = arith.constant 0 : index
    %0 = vector.load %arg1[%c0, %c0_0] : memref<16x128xf32, #tpu.memory_space<vmem>>, vector<16x128xf32>
    %cst = arith.constant 5.000000e-01 : f32
    %1 = vector.broadcast %cst : f32 to vector<16x128xf32>
    %2 = arith.mulf %1, %0 : vector<16x128xf32>
    %3 = math.tanh %2 : vector<16x128xf32>
    %cst_1 = arith.constant 5.000000e-01 : f32
    %4 = vector.broadcast %cst_1 : f32 to vector<16x128xf32>
    %5 = arith.mulf %4, %3 : vector<16x128xf32>
    %cst_2 = arith.constant 5.000000e-01 : f32
    %6 = vector.broadcast %cst_2 : f32 to vector<16x128xf32>
    %7 = arith.addf %5, %6 : vector<16x128xf32>
    %c0_3 = arith.constant 0 : index
    %c0_4 = arith.constant 0 : index
    %8 = vector.load %arg2[%c0_3, %c0_4] : memref<16x128xf32, #tpu.memory_space<vmem>>, vector<16x128xf32>
    tpu.vector_store %arg2[%c0_3, %c0_4], %7 {strides = array<i32>} : memref<16x128xf32, #tpu.memory_space<vmem>>, vector<16x128xf32>,
    return
  }
  func.func @transform_0(%arg0: i32) -> (i32, i32) {
    %c0_i32 = arith.constant 0 : i32
    %c0_i32_0 = arith.constant 0 : i32
    return %arg0, %c0_i32 : i32, i32
  }
  func.func @transform_1(%arg0: i32) -> (i32, i32) {
    %c0_i32 = arith.constant 0 : i32
    %c0_i32_0 = arith.constant 0 : i32
    return %arg0, %c0_i32 : i32, i32
  }
}

</mosaic_0001>

<bundles_post_ra>
// kernel: tpu_custom_call.1
= control target key start
LH: loop header
LB: loop body
LE: loop exit
PB: predicated region body
PF: predicated region fallthrough
CT: control target
= control target key end

     0   :  { %6 = vsyncpa [#allocation3], 0  ;;  %s152_s0 = inlined_call_operand.hbm [shape: f32[16,128], index: 0, kind: input, shape index: {}]   ;;  %s153_s1 = inlined_call_operand.hbm [shape: f32[16,128], index: 1, kind: output, shape index: {}]  }
   0x1   :  { %7 = vsyncpa [#allocation4], 0  ;;  %s108_s6 = smov [#allocation2]   ;;  %s60_s10 = scalar_lea.hbm %s152_s0, 256 }
   0x2   :  { %s13_s7 = sshll.u32 %s108_s6, 4  ;;  %p61_p0 = scmp.ne.s32.totalorder %s152_s0, %s60_s10  ;;  %s14_s7 = int_to_ptr.vmem [resolvable:$true] %s13_s7 }
   0x3   :  { %p64_p1 = scmp.lt.u32.totalorder %s60_s10, %s152_s0 }
   0x5   :  { %p66_p2 = pnand %p64_p1, %p61_p0 }
   0x7   :  { %69 = shalt.err (!%p66_p2)
}
   0x8   :  { %s70_s15 = scalar_lea.vmem %s14_s7, 256  ;;  %p75_p4 = scmp.lt.s32.totalorder %s14_s7, %s14_s7 }
   0x9   :  { %p71_p3 = scmp.ne.s32.totalorder %s14_s7, %s70_s15  ;;  %p76_p5 = scmp.lt.s32.totalorder %s70_s15, %s70_s15 }
   0xb   :  { %p77_p6 = por %p76_p5, %p75_p4 }
   0xd   :  { %p78_p7 = pnand %p77_p6, %p71_p3 }
   0xf   :  { %81 = shalt.err (!%p78_p7)
}
  0x10   :  { %s109_s16 = smov 128   ;;  %s110_s17 = smov 8  }
  0x11   :  { %19 = dma.hbm_to_vmem [thread:$0]  %s152_s0, 256, %s14_s7, [#allocation3], %s109_s16, %s109_s16, %s110_s17  }
  0x12   :  { %104 = dma.done.wait [#allocation3], 256  }
  0x13   :  { %105 = vsyncadd [#allocation3], 4294967040  ;;  %v23_v0 = vld [vmem:[#allocation2] sm:$0xff]  ;;  %v24_v1 = vld [vmem:[#allocation2 + $0x8] sm:$0xff]  ;;  %s111_s20 = smov [#allocation5]  }
  0x14   :  { %v25_v2 = vmul.f32 0.5, %v23_v0  ;;  %v26_v3 = vmul.f32 0.5, %v24_v1  ;;  %s40_s21 = sshll.u32 %s111_s20, 4  ;;  %s41_s21 = int_to_ptr.vmem [resolvable:$true] %s40_s21 }
  0x15   :  { %s82_s0 = scalar_lea.vmem %s41_s21, 256  ;;  %p87_p9 = scmp.lt.s32.totalorder %s41_s21, %s41_s21 }
  0x16   :  { %56 = vtanh.f32 %v25_v2  ;;  %p83_p8 = scmp.ne.s32.totalorder %s41_s21, %s82_s0  ;;  %p88_p10 = scmp.lt.s32.totalorder %s82_s0, %s82_s0 }
  0x17   :  { %58 = vtanh.f32 %v26_v3 }
  0x18   :  { %p89_p11 = por %p88_p10, %p87_p9 }
  0x1a   :  { %p90_p12 = pnand %p89_p11, %p83_p8 }
  0x20   :  { %v57_v4 = vpop.eup %56 }
  0x21   :  { %v59_v5 = vpop.eup %58  ;;  %v29_v6 = vmul.f32 0.5, %v57_v4 }
  0x22   :  { %v30_v7 = vmul.f32 0.5, %v59_v5 }
  0x23   :  { %v31_v8 = vadd.f32 0.5, %v29_v6 }
  0x24   :  { %v32_v9 = vadd.f32 0.5, %v30_v7 }
  0x25   :  { %33 = vst [vmem:[#allocation5] sm:$0xff] %v31_v8 }
  0x26   :  { %34 = vst [vmem:[#allocation5 + $0x8] sm:$0xff] %v32_v9 }
  0x27   :  { %93 = shalt.err (!%p90_p12)
}
  0x28   :  { %s94_s24 = scalar_lea.hbm %s153_s1, 256 }
  0x29   :  { %p95_p13 = scmp.ne.s32.totalorder %s153_s1, %s94_s24  ;;  %p98_p0 = scmp.lt.u32.totalorder %s94_s24, %s153_s1 }
  0x2b   :  { %p100_p1 = pnand %p98_p0, %p95_p13 }
  0x2d   :  { %103 = shalt.err (!%p100_p1)
}
  0x2e   :  { %46 = dma.vmem_to_hbm [thread:$0]  %s41_s21, 256, %s153_s1, [#allocation4], %s109_s16, %s109_s16, %s110_s17  }
  0x2f   :  { %106 = dma.done.wait [#allocation4], 256  }
  0x30   :  { %107 = vsyncadd [#allocation4], 4294967040 }
  0x31   :  { %50 = vsyncpa [#allocation3], 1 }
  0x32   :  { %51 = vsyncpa [#allocation4], 1 }

</bundles_post_ra>
